<compile_context>
chip_gen: v7x
topology: tpu7x:2x2x1
jax: 0.10.0
libtpu: 0.0.40
codegen_flags: <defaults>
</compile_context>

<pallas_src>
import functools
import math

import jax
import jax.numpy as jnp
from jax import lax
from jax.experimental import pallas as pl
from jax.experimental.pallas import tpu as pltpu


# ----------------------------------------------------------------------------- helpers
def _vmem_limit_bytes():
    """Scoped VMEM limit derived from the chip's physical VMEM capacity."""
    cap = 64 * 1024 * 1024  # conservative fallback (v7x-sized) if query fails
    try:
        info = pltpu.get_tpu_info()
        for name in ("vmem_capacity_bytes", "vmem_size_bytes", "vmem_bytes"):
            v = getattr(info, name, None)
            if v:
                cap = int(v)
                break
    except Exception:
        pass
    return max(32 * 1024 * 1024, min((cap * 3) // 4, 96 * 1024 * 1024))


def _pick_spatial_tile(S, C, itemsize, target_bytes):
    """Largest lane-dense (multiple-of-128) spatial tile within target_bytes.

    The unrolled lane-group accumulation in the pool kernel is capped at
    64 groups (tS <= 8192 lanes).  If the whole spatial extent fits, use it
    (a full-extent last dim is always a legal block, any S)."""
    tS = (target_bytes // max(1, C * itemsize)) // 128 * 128
    tS = max(128, min(tS, 64 * 128))
    if tS >= S:
        return int(S)
    return int(tS)


def _conv1d_sigmoid_channels(pooled, w_ref, k):
    """Channel-axis Conv1d (cross-correlation, zero pad) + sigmoid.

    pooled: (1, C, 1) f32 per-channel means (channels on the sublane axis).
    w_ref:  (k,) f32 taps in SMEM.  Runs once per batch -> negligible cost."""
    C = pooled.shape[1]
    pad = (k - 1) // 2
    if pad > 0:
        z = jnp.zeros((1, pad, 1), pooled.dtype)
        padded = jnp.concatenate([z, pooled, z], axis=1)
    else:
        padded = pooled
    acc = w_ref[0] * padded[:, 0:C, :]
    for j in range(1, k):
        acc = acc + w_ref[j] * padded[:, j:j + C, :]
    return jax.nn.sigmoid(acc)


# ----------------------------------------------------------------------------- kernels
def _eca_fused_kernel(x_ref, w_ref, o_ref, *, S, inv_S, k):
    # x_ref: (1, C, S) resident slab; w_ref: (k,) SMEM; o_ref: (1, C, S).
    x = x_ref[...].astype(jnp.float32)                      # (1, C, S)
    ngrp = S // 128
    if 2 <= ngrp <= 64:
        # Lane-wise accumulation (VPU adds of aligned 128-lane slabs), one
        # cross-lane reduce at the end -> keeps the pass HBM-bound on v7x.
        acc = x[:, :, 0:128]
        for g in range(1, ngrp):
            acc = acc + x[:, :, g * 128:(g + 1) * 128]
        total = jnp.sum(acc, axis=2, keepdims=True)          # (1, C, 1)
        rem = S - ngrp * 128
        if rem:
            total = total + jnp.sum(x[:, :, ngrp * 128:], axis=2, keepdims=True)
    else:
        total = jnp.sum(x, axis=2, keepdims=True)
    pooled = total * inv_S                                   # (1, C, 1) global mean
    attn = _conv1d_sigmoid_channels(pooled, w_ref, k)        # (1, C, 1)
    o_ref[...] = (x * attn).astype(o_ref.dtype)


def _eca_pool_kernel(x_ref, w_ref, attn_ref, acc_ref, *, S, tS, inv_S, k):
    # x_ref:    (1, C, tS) spatial tile
    # w_ref:    (k,)       SMEM taps
    # attn_ref: (1, C, 1)  per-channel attention (resident across spatial axis)
    # acc_ref:  (1, C, 128) f32 lane-wise accumulator scratch
    s = pl.program_id(1)

    @pl.when(s == 0)
    def _init():
        acc_ref[...] = jnp.zeros_like(acc_ref)

    x = x_ref[...].astype(jnp.float32)                       # (1, C, tS)
    C = x.shape[1]
    if S % tS != 0:
        # Masked remainder tile (cdiv grid): zero out-of-range lanes.
        lane = lax.broadcasted_iota(jnp.int32, (1, C, tS), 2)
        x = jnp.where(s * tS + lane < S, x, 0.0)

    if tS % 128 == 0:
        acc = acc_ref[...]
        for g in range(tS // 128):                           # pure VPU adds
            acc = acc + x[:, :, g * 128:(g + 1) * 128]
        acc_ref[...] = acc
    else:
        # Rare fallback (single full-extent block with S not a 128-multiple).
        acc_ref[:, :, 0:1] = acc_ref[:, :, 0:1] + jnp.sum(x, axis=2, keepdims=True)

    @pl.when(s == pl.num_programs(1) - 1)
    def _finalize():
        pooled = jnp.sum(acc_ref[...], axis=2, keepdims=True) * inv_S   # (1, C, 1)
        attn_ref[...] = _conv1d_sigmoid_channels(pooled, w_ref, k)


def _eca_scale_kernel(x_ref, attn_ref, o_ref):
    # x_ref: (1, C, tS); attn_ref: (1, C, 1) f32; o_ref: (1, C, tS).
    o_ref[...] = (x_ref[...].astype(jnp.float32) * attn_ref[...]).astype(o_ref.dtype)


# ----------------------------------------------------------------------------- wrapper
def eca_forward(x_nchw, conv_w, *, block_bytes=None, force_two_pass=False):
    """x_nchw: (N, C, H, W); conv_w: (1, 1, k) PyTorch Conv1d weight (no bias).
    Returns (N, C, H, W), same dtype as x, matching eca_block.forward."""
    N, C, H, W = x_nchw.shape
    k = int(conv_w.size)
    S = H * W
    dtype = x_nchw.dtype
    itemsize = jnp.dtype(dtype).itemsize

    # Zero-copy views: NCHW memory == (N, C, H*W). No relayout, no wrapper astype.
    x_s = x_nchw.reshape(N, C, S)
    w = conv_w.reshape(k).astype(jnp.float32)

    vmem_limit = _vmem_limit_bytes()
    inv_S = 1.0 / float(S)
    slab_bytes = C * S * itemsize

    # ---------------- fused single-pass path (1 read + 1 write of x) ----------
    fused_ok = (not force_two_pass) and (4 * slab_bytes + (2 << 20) <= vmem_limit)
    if fused_ok:
        out_s = pl.pallas_call(
            functools.partial(_eca_fused_kernel, S=S, inv_S=inv_S, k=k),
            out_shape=jax.ShapeDtypeStruct((N, C, S), dtype),
            grid_spec=pltpu.PrefetchScalarGridSpec(
                num_scalar_prefetch=0,
                grid=(N,),
                in_specs=[
                    pl.BlockSpec((1, C, S), lambda n: (n, 0, 0)),
                    pl.BlockSpec(memory_space=pltpu.MemorySpace.SMEM),
                ],
                out_specs=pl.BlockSpec((1, C, S), lambda n: (n, 0, 0)),
            ),
            compiler_params=pltpu.CompilerParams(
                dimension_semantics=("parallel",),
                vmem_limit_bytes=vmem_limit,
            ),
            cost_estimate=pl.CostEstimate(
                flops=int(2 * N * C * S),
                transcendentals=int(N * C),
                bytes_accessed=int(2 * N * C * S * itemsize),
            ),
        )(x_s, w)
        return out_s.reshape(N, C, H, W)

    # ---------------- streaming two-pass path ---------------------------------
    target = block_bytes if block_bytes is not None else max(
        2 * 1024 * 1024, min(8 * 1024 * 1024, vmem_limit // 6))
    tS = _pick_spatial_tile(S, C, itemsize, target)
    nS = pl.cdiv(S, tS)

    # Pass A: global average pool (lane-wise accumulate) + channel conv + sigmoid.
    attn = pl.pallas_call(
        functools.partial(_eca_pool_kernel, S=S, tS=tS, inv_S=inv_S, k=k),
        out_shape=jax.ShapeDtypeStruct((N, C, 1), jnp.float32),
        grid_spec=pltpu.PrefetchScalarGridSpec(
            num_scalar_prefetch=0,
            grid=(N, nS),                               # reduction (spatial) axis last
            in_specs=[
                pl.BlockSpec((1, C, tS), lambda n, s: (n, 0, s)),
                pl.BlockSpec(memory_space=pltpu.MemorySpace.SMEM),
            ],
            out_specs=pl.BlockSpec((1, C, 1), lambda n, s: (n, 0, 0)),
            scratch_shapes=[pltpu.VMEM((1, C, 128), jnp.float32)],
        ),
        compiler_params=pltpu.CompilerParams(
            dimension_semantics=("parallel", "arbitrary"),
            vmem_limit_bytes=vmem_limit,
        ),
        cost_estimate=pl.CostEstimate(
            flops=int(N * C * S),
            transcendentals=int(N * C),
            bytes_accessed=int(N * C * S * itemsize),
        ),
    )(x_s, w)

    # Pass B: out = x * attention (per-channel broadcast along lanes).
    out_s = pl.pallas_call(
        _eca_scale_kernel,
        out_shape=jax.ShapeDtypeStruct((N, C, S), dtype),
        grid_spec=pltpu.PrefetchScalarGridSpec(
            num_scalar_prefetch=0,
            grid=(N, nS),
            in_specs=[
                pl.BlockSpec((1, C, tS), lambda n, s: (n, 0, s)),
                pl.BlockSpec((1, C, 1), lambda n, s: (n, 0, 0)),
            ],
            out_specs=pl.BlockSpec((1, C, tS), lambda n, s: (n, 0, s)),
        ),
        compiler_params=pltpu.CompilerParams(
            dimension_semantics=("parallel", "parallel"),
            vmem_limit_bytes=vmem_limit,
        ),
        cost_estimate=pl.CostEstimate(
            flops=int(N * C * S),
            transcendentals=0,
            bytes_accessed=int(2 * N * C * S * itemsize),
        ),
    )(x_s, attn)

    return out_s.reshape(N, C, H, W)


def eca_kernel_size(channel, b=1, gamma=2):
    k = int(abs((math.log(channel, 2) + b) / gamma))
    return k if k % 2 else k + 1


def _reference(x_nchw, conv_w):
    # Pure-JAX reference of eca_block.forward.
    N, C, H, W = x_nchw.shape
    k = int(conv_w.size)
    pad = (k - 1) // 2
    w = conv_w.reshape(k).astype(jnp.float32)
    pooled = jnp.mean(x_nchw.astype(jnp.float32), axis=(2, 3))        # (N, C)
    padded = jnp.pad(pooled, ((0, 0), (pad, pad)))
    att = sum(w[j] * padded[:, j:j + C] for j in range(k))
    att = jax.nn.sigmoid(att)
    return (x_nchw.astype(jnp.float32) * att[:, :, None, None]).astype(x_nchw.dtype)


if __name__ == "__main__":
    key = jax.random.PRNGKey(0)
    k_x, k_w = jax.random.split(key, 2)

    # Case 1: fused single-pass path (slab easily fits VMEM), S multiple of 128.
    N, C, H, W = 2, 64, 16, 16                    # S = 256
    ksize = eca_kernel_size(C)                    # = 3 for C = 64
    x = jax.random.normal(k_x, (N, C, H, W), dtype=jnp.float32)
    conv_w = 0.5 * jax.random.normal(k_w, (1, 1, ksize), dtype=jnp.float32)

    out = jax.block_until_ready(eca_forward(x, conv_w))
    ref = _reference(x, conv_w)
    assert out.shape == (N, C, H, W), out.shape
    err = float(jnp.max(jnp.abs(out - ref)))
    assert jnp.allclose(out, ref, atol=1e-5, rtol=1e-5), err

    # Case 2: streaming two-pass path with a non-128-multiple spatial extent
    # (exercises budget-driven tiles, the cdiv grid and the masked remainder tile).
    N2, C2, H2, W2 = 2, 64, 14, 14                # S = 196
    x2 = jax.random.normal(k_x, (N2, C2, H2, W2), dtype=jnp.float32)
    out2 = jax.block_until_ready(
        eca_forward(x2, conv_w, force_two_pass=True, block_bytes=C2 * 128 * 4))
    ref2 = _reference(x2, conv_w)
    err2 = float(jnp.max(jnp.abs(out2 - ref2)))
    assert jnp.allclose(out2, ref2, atol=1e-5, rtol=1e-5), err2

    print("KERNEL_OK")
</pallas_src>

<mosaic_0001>
module attributes {stable_mosaic.version = 11 : i64} {
  func.func @_eca_fused_kernel(%arg0: i32, %arg1: memref<1x64x256xf32, #tpu.memory_space<vmem>>, %arg2: memref<3xf32, #tpu.memory_space<smem>>, %arg3: memref<1x64x256xf32, #tpu.memory_space<vmem>>) attributes {dimension_semantics = [#tpu.dimension_semantics<parallel>], iteration_bounds = array<i64: 2>, scalar_prefetch = 0 : i64, scratch_operands = 0 : i64, tpu.core_type = #tpu.core_type<tc>, window_params = [{transform_indices = @transform_0, window_bounds = array<i64: 1, 64, 256>}, {transform_indices = @transform_1, window_bounds = array<i64: 3>}, {transform_indices = @transform_2, window_bounds = array<i64: 1, 64, 256>}]} {
    %c0 = arith.constant 0 : index
    %c0_0 = arith.constant 0 : index
    %c0_1 = arith.constant 0 : index
    %0 = vector.load %arg1[%c0, %c0_0, %c0_1] : memref<1x64x256xf32, #tpu.memory_space<vmem>>, vector<1x64x256xf32>
    %1 = vector.extract_strided_slice %0 {offsets = [0, 0, 0], sizes = [1, 64, 128], strides = [1, 1, 1]} : vector<1x64x256xf32> to vector<1x64x128xf32>
    %2 = vector.extract_strided_slice %0 {offsets = [0, 0, 128], sizes = [1, 64, 128], strides = [1, 1, 1]} : vector<1x64x256xf32> to vector<1x64x128xf32>
    %3 = arith.addf %1, %2 : vector<1x64x128xf32>
    %cst = arith.constant dense<0.000000e+00> : vector<1x64xf32>
    %4 = vector.multi_reduction <add>, %3, %cst [2] : vector<1x64x128xf32> to vector<1x64xf32>
    %5 = vector.shape_cast %4 : vector<1x64xf32> to vector<1x64x1xf32>
    %cst_2 = arith.constant 3.906250e-03 : f32
    %6 = vector.broadcast %cst_2 : f32 to vector<1x64x1xf32>
    %7 = arith.mulf %5, %6 : vector<1x64x1xf32>
    %cst_3 = arith.constant 0.000000e+00 : f32
    %8 = vector.broadcast %cst_3 : f32 to vector<1x1x1xf32>
    %9 = tpu.concatenate %8, %7, %8 in 1 : vector<1x1x1xf32>, vector<1x64x1xf32>, vector<1x1x1xf32> -> vector<1x66x1xf32>
    %c0_4 = arith.constant 0 : index
    %10 = memref.load %arg2[%c0_4] : memref<3xf32, #tpu.memory_space<smem>>
    %11 = vector.extract_strided_slice %9 {offsets = [0, 0, 0], sizes = [1, 64, 1], strides = [1, 1, 1]} : vector<1x66x1xf32> to vector<1x64x1xf32>
    %12 = vector.broadcast %10 : f32 to vector<1x64x1xf32>
    %13 = arith.mulf %12, %11 : vector<1x64x1xf32>
    %c1 = arith.constant 1 : index
    %14 = memref.load %arg2[%c1] : memref<3xf32, #tpu.memory_space<smem>>
    %15 = vector.extract_strided_slice %9 {offsets = [0, 1, 0], sizes = [1, 64, 1], strides = [1, 1, 1]} : vector<1x66x1xf32> to vector<1x64x1xf32>
    %16 = vector.broadcast %14 : f32 to vector<1x64x1xf32>
    %17 = arith.mulf %16, %15 : vector<1x64x1xf32>
    %18 = arith.addf %13, %17 : vector<1x64x1xf32>
    %c2 = arith.constant 2 : index
    %19 = memref.load %arg2[%c2] : memref<3xf32, #tpu.memory_space<smem>>
    %20 = vector.extract_strided_slice %9 {offsets = [0, 2, 0], sizes = [1, 64, 1], strides = [1, 1, 1]} : vector<1x66x1xf32> to vector<1x64x1xf32>
    %21 = vector.broadcast %19 : f32 to vector<1x64x1xf32>
    %22 = arith.mulf %21, %20 : vector<1x64x1xf32>
    %23 = arith.addf %18, %22 : vector<1x64x1xf32>
    %24 = arith.negf %23 : vector<1x64x1xf32>
    %25 = math.exp %24 : vector<1x64x1xf32>
    %cst_5 = arith.constant 1.000000e+00 : f32
    %26 = vector.broadcast %cst_5 : f32 to vector<1x64x1xf32>
    %27 = arith.addf %26, %25 : vector<1x64x1xf32>
    %28 = arith.divf %26, %27 : vector<1x64x1xf32>
    %29 = vector.broadcast %28 : vector<1x64x1xf32> to vector<1x64x256xf32>
    %30 = arith.mulf %0, %29 : vector<1x64x256xf32>
    %c0_6 = arith.constant 0 : index
    %c0_7 = arith.constant 0 : index
    %c0_8 = arith.constant 0 : index
    %31 = vector.load %arg3[%c0_6, %c0_7, %c0_8] : memref<1x64x256xf32, #tpu.memory_space<vmem>>, vector<1x64x256xf32>
    tpu.vector_store %arg3[%c0_6, %c0_7, %c0_8], %30 {strides = array<i32>} : memref<1x64x256xf32, #tpu.memory_space<vmem>>, vector<1x64x256xf32>,
    return
  }
  func.func @transform_0(%arg0: i32) -> (i32, i32, i32) {
    %c0_i32 = arith.constant 0 : i32
    %c0_i32_0 = arith.constant 0 : i32
    %c0_i32_1 = arith.constant 0 : i32
    return %arg0, %c0_i32, %c0_i32_0 : i32, i32, i32
  }
  func.func @transform_1(%arg0: i32) -> i32 {
    %c0_i32 = arith.constant 0 : i32
    %c0_i32_0 = arith.constant 0 : i32
    return %c0_i32 : i32
  }
  func.func @transform_2(%arg0: i32) -> (i32, i32, i32) {
    %c0_i32 = arith.constant 0 : i32
    %c0_i32_0 = arith.constant 0 : i32
    %c0_i32_1 = arith.constant 0 : i32
    return %arg0, %c0_i32, %c0_i32_0 : i32, i32, i32
  }
}

</mosaic_0001>

<bundles_post_ra>
// kernel: tpu_custom_call.1
= control target key start
LH: loop header
LB: loop body
LE: loop exit
PB: predicated region body
PF: predicated region fallthrough
CT: control target
= control target key end

     0   :  { %7 = vsyncpa [#allocation3], 0  ;;  %s1214_s0 = inlined_call_operand.hbm [shape: f32[2,64,256], index: 0, kind: input, shape index: {}]   ;;  %s1215_s1 = inlined_call_operand.vmem [shape: f32[3], index: 1, kind: input, shape index: {}]   ;;  %s1216_s2 = inlined_call_operand.hbm [shape: f32[2,64,256], index: 2, kind: output, shape index: {}]  }
   0x1   :  { %9 = vsyncpa [#allocation3 + $0x1], 0 }
   0x2   :  { %10 = vsyncpa [#allocation5], 0 }
   0x3   :  { %11 = vsyncpa [#allocation4], 0 }
   0x4   :  { %13 = vsyncpa [#allocation4 + $0x1], 0  ;;  %s860_s9 = smov 0   ;;  %s862_s10 = smov 0  }
   0x5   :  { %s864_s11 = smov 0   ;;  %s866_s12 = smov 0  }
   0x6 LB: > { %s881_s13 = sadd.s32 4294967295, %s835_s12   ;;  %s596_s14 = sadd.s32 4294967294, %s835_s12   ;;  %s835_s12 = sphi %s866_s12, %s1236_s12   ;;  %s831_s11 = sphi %s864_s11, %s1235_s11   ;;  %s827_s10 = sphi %s862_s10, %s1234_s10   ;;  %s823_s9 = sphi %s860_s9, %s1233_s9  }
   0x7   : > { %s885_s15 = sadd.s32 1, %s835_s12   ;;  %s26_s16 = sadd.s32 1, %s831_s11 }
   0x8   : > { %s23_s17 = ssub.s32 %s835_s12, %s885_s15  ;;  %p33_p0 = scmp.ne.s32.totalorder %s831_s11, %s827_s10 }
   0x9   : > { %p24_p1 = scmp.eq.s32.totalorder %s23_s17, 0  ;;  %p34_p2 = scmp.eq.s32.totalorder %s835_s12, 0 }
   0xa   : > { %p39_p3 = scmp.ne.s32.totalorder %s827_s10, %s823_s9  ;;  %p1218_p4 = scmp.eq.s32.totalorder %s881_s13, 0 }
   0xb   : > { %s897_s18 = scalar_select %p24_p1, %s831_s11, %s26_s16  }
   0xc   : > { %p899_p5 = por %p34_p2, %p33_p0  ;;  %p905_p6 = por %p1218_p4, %p39_p3 }
   0xd   : > { %p84_p7 = scmp.eq.s32.totalorder %s881_s13, 1  ;;  %p90_p8 = scmp.eq.s32.totalorder %s596_s14, 1 }
   0xe   : > { %s1221_s20 = scalar_select %p905_p6, 1, 0 }
   0xf   : > { %p597_p9 = scmp.ge.s32.totalorder %s835_s12, 1  ;;  %p97_p10 = scmp.lt.s32.totalorder %s835_s12, 3 }
  0x10   : > { %p912_p11 = por %p84_p7, %p33_p0  ;;  %p916_p12 = por %p90_p8, %p39_p3 }
  0x11   : > { %p920_p13 = pnand %p597_p9, %p97_p10  ;;  %s110_s26 = sshll.u32 %s1215_s1, 4  ;;  %s111_s26 = int_to_ptr.vmem [resolvable:$true] %s110_s26 }
  0x12   : > { %s1222_s21 = scalar_select %p912_p11, 1, 0 }
  0x13   : > { %s1223_s22 = scalar_select %p916_p12, 1, 0 }
  0x14   : > { %p632_p1 = pneg %p920_p13  ;;  %p645_p2 = scmp.lt.s32.totalorder %s835_s12, 2 }
  0x15   : > { %s121_s28 = sand.u32 1, %s831_s11   ;;  %s720_s3 = scalar_lea.vmem %s111_s26, 16 }
  0x16   : > { %p933_p7 = pnand %p632_p1, %p1218_p4  ;;  %p940_p3 = pnand %p645_p2, %p899_p5 }
  0x17   : > { %s600_s30 = sshll.u32 %s121_s28, 7  ;;  %p721_p8 = scmp.ne.s32.totalorder %s111_s26, %s720_s3 }
  0x18   : > { %p722_p9 = pneg %p933_p7  ;;  %p728_p12 = scmp.lt.s32.totalorder %s111_s26, %s111_s26 }
  0x19   : > { %p729_p11 = scmp.lt.s32.totalorder %s720_s3, %s720_s3 }
  0x1a   : > { %p723_p10 = pnand %p722_p9, %p721_p8 }
  0x1b   : > { %p730_p1 = por %p729_p11, %p728_p12 }
  0x1c   : > { %p724_p0 = pneg %p723_p10 }
  0x1e   : > { %p731_p4 = pnand %p730_p1, %p724_p0 }
  0x20   : > { %734 = shalt.err (!%p731_p4)
}
  0x21   : > { %s837_s4 = smov [#allocation6]   ;;  %s622_s5 = sshll.u32 %s835_s12, 11 }
  0x22   : > { %635 = dma.vmem_to_smem (!%p933_p7), %s111_s26, 16, %s837_s4, [#allocation5]  }
  0x23   : > { %s125_s6 = scalar_lea.vmem [#allocation2], %s600_s30  ;;  %s952_s16 = scalar_lea.hbm %s1214_s0, %s622_s5 }
  0x24   : > { %s132_s7 = sshll.u32 %s125_s6, 4  ;;  %s956_s17 = scalar_lea.sflag [#allocation3], %s121_s28  ;;  %s954_s7 = int_to_ptr.vmem [resolvable:$true] %s132_s7 }
  0x25   : > { %s735_s19 = scalar_lea.hbm %s952_s16, 2048  ;;  %p737_p5 = pneg %p940_p3 }
  0x26   : > { %p736_p4 = scmp.ne.s32.totalorder %s952_s16, %s735_s19  ;;  %s740_s26 = scalar_lea.hbm %s1214_s0, 4096 }
  0x27   : > { %p741_p0 = scmp.lt.u32.totalorder %s952_s16, %s1214_s0  ;;  %p742_p2 = scmp.lt.u32.totalorder %s740_s26, %s735_s19 }
  0x28   : > { %p738_p11 = pnand %p737_p5, %p736_p4  ;;  %p744_p8 = scmp.lt.u32.totalorder %s735_s19, %s952_s16 }
  0x29   : > { %p743_p7 = por %p742_p2, %p741_p0 }
  0x2a   : > { %p739_p12 = pneg %p738_p11 }
  0x2b   : > { %p745_p9 = por %p744_p8, %p743_p7 }
  0x2d   : > { %p746_p10 = pnand %p745_p9, %p739_p12 }
  0x2f   : > { %749 = shalt.err (!%p746_p10)
}
  0x30   : > { %s750_s28 = scalar_lea.vmem %s954_s7, 2048  ;;  %s838_s3 = smov [#allocation2]  }
  0x31   : > { %p751_p1 = scmp.ne.s32.totalorder %s954_s7, %s750_s28  ;;  %s755_s4 = sshll.u32 %s838_s3, 4  ;;  %s756_s4 = int_to_ptr.vmem [resolvable:$false] %s755_s4 }
  0x32   : > { %s757_s5 = scalar_lea.vmem %s756_s4, 4096  ;;  %p758_p6 = scmp.lt.s32.totalorder %s954_s7, %s756_s4 }
  0x33   : > { %p753_p4 = pnand %p751_p1, %p737_p5  ;;  %p759_p0 = scmp.lt.s32.totalorder %s757_s5, %s750_s28 }
  0x35   : > { %p754_p11 = pneg %p753_p4  ;;  %p760_p2 = por %p759_p0, %p758_p6 }
  0x37   : > { %p761_p7 = pnand %p760_p2, %p754_p11 }
  0x39   : > { %764 = shalt.err (!%p761_p7)
}
  0x3a   : > { %s839_s6 = smov 256   ;;  %s840_s8 = smov 16  }
  0x3b   : > { %639 = dma.hbm_to_vmem [thread:$0]  (!%p940_p3), %s952_s16, 2048, %s954_s7, %s956_s17, %s839_s6, %s839_s6, %s840_s8  }
  0x3c   : > { %144 = sbr.rel (%p920_p13) target bundleno = 434 (0x1b2), region = 28  ;;  %s987_s14 = sand.u32 (!%p920_p13), 1, %s827_s10  }
  0x3d   : > { %s604_s19 = sshll.u32 (!%p920_p13), %s987_s14, 7  ;;  %s147_s24 = scalar_lea.sflag (!%p920_p13), [#allocation3], %s987_s14 }
  0x3e   : > { %s993_s25 = scalar_lea.vmem (!%p920_p13), [#allocation2], %s604_s19  ;;  %p1227_p6 = scmp.ne.s32.totalorder (!%p920_p13), %s1221_s20, 0 }
  0x43   : > { %810 = dma.done.wait (%p1227_p6), %s147_s24, 2048  }
  0x44   : > { %812 = vsyncadd (%p1227_p6), %s147_s24, 4294965248  ;;  %p1228_p3 = scmp.eq.s32.totalorder %s881_s13, 0 }
  0x46   : > { %814 = dma.done.wait (%p1228_p3), [#allocation5], 16   ;;  %p1229_p13 = pmov %p1228_p3 }
  0x48   : > { %816 = vsyncadd (%p1229_p13), [#allocation5], 4294967280 }
  0x49   : > { %159 = sfence }
  0x4a   : > { %v1004_v0 = vld [vmem:[%s993_s25 + $0x20] sm:$0xff]  ;;  %v1007_v1 = vld [vmem:[%s993_s25 + $0x28] sm:$0xff]  ;;  %v1018_v5 = vld [vmem:[%s993_s25 + $0x30] sm:$0xff]  ;;  %v841_v24 = vmov 0   ;;  %s607_s20 = sld [smem:[#allocation6 + $0x1]]  ;;  %s608_s23 = sld [smem:[#allocation6 + $0x2]] }
  0x4b   : > { %v1010_v2 = vld [vmem:[%s993_s25] sm:$0xff]  ;;  %v194_v3 = vadd.f32 %v1007_v1, %v1004_v0  ;;  %v1015_v4 = vld [vmem:[%s993_s25 + $0x8] sm:$0xff]  ;;  %v1021_v6 = vld [vmem:[%s993_s25 + $0x38] sm:$0xff]  ;;  %687 = vset.pattern.permute.xlu1 %v841_v24  ;;  %686 = vset.pattern.permute.xlu0 %v841_v24  ;;  %s259_s29 = sld [smem:[#allocation6]]  ;;  %vm232_vm0 = vcmask 1040384   ;;  %vm289_vm1 = vcmask 1046528  }
  0x4c   : > { %v192_v7 = vadd.f32 %v1015_v4, %v1010_v2  ;;  %v1026_v8 = vld [vmem:[%s993_s25 + $0x10] sm:$0xff]  ;;  %v1029_v9 = vld [vmem:[%s993_s25 + $0x18] sm:$0xff]  ;;  %v195_v10 = vadd.f32 %v1021_v6, %v1018_v5  ;;  %v1042_v14 = vld [vmem:[%s993_s25 + $0x40] sm:$0xff]  ;;  %vm343_vm2 = vcmask 1045504   ;;  %s1133_s7 = scalar_lea.vmem [#allocation7], %s604_s19  ;;  %s623_s16 = sshll.u32 %s881_s13, 11 }
  0x4d   : > { %204 = vadd.xlane.f32.xlu1 %v194_v3  ;;  %v193_v11 = vadd.f32 %v1029_v9, %v1026_v8  ;;  %v1036_v12 = vld [vmem:[%s993_s25 + $0x50] sm:$0xff]  ;;  %v1039_v13 = vld [vmem:[%s993_s25 + $0x58] sm:$0xff]  ;;  %v1045_v15 = vld [vmem:[%s993_s25 + $0x48] sm:$0xff]  ;;  %s511_s17 = sshll.u32 %s1133_s7, 4  ;;  %s1164_s30 = scalar_lea.hbm %s1216_s2, %s623_s16  ;;  %s1166_s17 = int_to_ptr.vmem [resolvable:$true] %s511_s17 }
  0x4e   : > { %200 = vadd.xlane.f32.xlu0 %v192_v7  ;;  %v197_v16 = vadd.f32 %v1039_v13, %v1036_v12  ;;  %v196_v17 = vadd.f32 %v1045_v15, %v1042_v14  ;;  %v1052_v18 = vld [vmem:[%s993_s25 + $0x70] sm:$0xff]  ;;  %v1055_v19 = vld [vmem:[%s993_s25 + $0x78] sm:$0xff]  ;;  %v1058_v20 = vld [vmem:[%s993_s25 + $0x60] sm:$0xff]  ;;  %s498_s13 = scalar_lea.sflag [#allocation4], %s987_s14  ;;  %s765_s28 = scalar_lea.vmem %s1166_s17, 2048 }
  0x4f   : > { %v1061_v21 = vld [vmem:[%s993_s25 + $0x68] sm:$0xff]  ;;  %v199_v22 = vadd.f32 %v1055_v19, %v1052_v18  ;;  %p766_p5 = scmp.ne.s32.totalorder %s1166_s17, %s765_s28  ;;  %p1230_p12 = scmp.ne.s32.totalorder %s1222_s21, 0 }
  0x50   : > { %v198_v23 = vadd.f32 %v1061_v21, %v1058_v20  ;;  %v1067_v29 = vstv %s607_s20  ;;  %v1069_v33 = vstv %s608_s23  ;;  %s842_s3 = smov [#allocation7]  }
  0x51   : > { %206 = vadd.xlane.f32.xlu1 %v195_v10  ;;  %v1071_v36 = vstv %s259_s29  ;;  %p767_p8 = pnand %p766_p5, %p1230_p12  ;;  %s769_s4 = sshll.u32 %s842_s3, 4  ;;  %s770_s4 = int_to_ptr.vmem [resolvable:$false] %s769_s4 }
  0x52   : > { %202 = vadd.xlane.f32.xlu0 %v193_v11  ;;  %s771_s5 = scalar_lea.vmem %s770_s4, 4096  ;;  %p772_p10 = scmp.lt.s32.totalorder %s1166_s17, %s770_s4 }
  0x53   : > { %p768_p9 = pneg %p767_p8  ;;  %p773_p1 = scmp.lt.s32.totalorder %s771_s5, %s765_s28 }
  0x55   : > { %210 = vadd.xlane.f32.xlu1 %v197_v16  ;;  %p774_p4 = por %p773_p1, %p772_p10 }
  0x56   : > { %208 = vadd.xlane.f32.xlu0 %v196_v17 }
  0x57   : > { %p775_p11 = pnand %p774_p4, %p768_p9 }
  0x59   : > { %214 = vadd.xlane.f32.xlu1 %v199_v22 }
  0x5a   : > { %212 = vadd.xlane.f32.xlu0 %v198_v23 }
  0xda   : > { %v205_v25 = vpop.xlane.xlu1 %204 }
  0xdb   : > { %v218_v26 = vmul.f32 0.00390625, %v205_v25  ;;  %v201_v27 = vpop.xlane.xlu0 %200 }
  0xdc   : > { %v216_v28 = vmul.f32 0.00390625, %v201_v27 }
  0xdd   : > { %v236_v32 = vrot.slane %v218_v26, 7 }
  0xde   : > { %v233_v30 = vrot.slane %v216_v28, 7  ;;  %v207_v31 = vpop.xlane.xlu1 %206 }
  0xdf   : > { %v219_v34 = vmul.f32 0.00390625, %v207_v31  ;;  %v203_v35 = vpop.xlane.xlu0 %202 }
  0xe0   : > { %v257_v37 = vsel %vm232_vm0, 0.0, %v233_v30  ;;  %v217_v38 = vmul.f32 0.00390625, %v203_v35 }
  0xe1   : > { %v271_v39 = vmul.f32 %v1067_v29, %v257_v37  ;;  %v238_v40 = vrot.slane %v219_v34, 7  ;;  %v325_v41 = vmul.f32 %v1069_v33, %v257_v37  ;;  %v261_v44 = vmul.f32 %v1071_v36, %v257_v37 }
  0xe2   : > { %v234_v42 = vrot.slane %v217_v38, 7  ;;  %v211_v43 = vpop.xlane.xlu1 %210 }
  0xe3   : > { %v239_v45 = vsel %vm232_vm0, %v236_v32, %v238_v40  ;;  %v209_v46 = vpop.xlane.xlu0 %208  ;;  %v221_v50 = vmul.f32 0.00390625, %v211_v43  ;;  %v290_v51 = vrot.slane %v271_v39, 1  ;;  %v344_v55 = vrot.slane %v325_v41, 2 }
  0xe4   : > { %v274_v47 = vmul.f32 %v1067_v29, %v239_v45  ;;  %v1080_v48 = vmul.f32 %v1069_v33, %v239_v45  ;;  %v235_v49 = vsel %vm232_vm0, %v233_v30, %v234_v42  ;;  %v237_v52 = vsel %vm232_vm0, %v234_v42, %v236_v32 }
  0xe5   : > { %v272_v53 = vmul.f32 %v1067_v29, %v235_v49  ;;  %v326_v54 = vmul.f32 %v1069_v33, %v235_v49  ;;  %v262_v57 = vmul.f32 %v1071_v36, %v235_v49  ;;  %v273_v58 = vmul.f32 %v1067_v29, %v237_v52 }
  0xe6   : > { %v295_v56 = vrot.slane %v274_v47, 1  ;;  %v349_v59 = vrot.slane %v1080_v48, 2  ;;  %v327_v61 = vmul.f32 %v1069_v33, %v237_v52  ;;  %v242_v7 = vrot.slane %v221_v50, 7  ;;  %v215_v28 = vpop.xlane.xlu1 %214 }
  0xe7   : > { %v291_v60 = vrot.slane %v272_v53, 1  ;;  %v345_v62 = vrot.slane %v326_v54, 2  ;;  %v213_v63 = vpop.xlane.xlu0 %212  ;;  %v293_v3 = vrot.slane %v273_v58, 1  ;;  %v220_v10 = vmul.f32 0.00390625, %v209_v46 }
  0xe8   : > { %v222_v11 = vmul.f32 0.00390625, %v213_v63  ;;  %v263_v16 = vmul.f32 %v1071_v36, %v237_v52  ;;  %v347_v23 = vrot.slane %v327_v61, 2  ;;  %v264_v41 = vmul.f32 %v1071_v36, %v239_v45 }
  0xe9   : > { %v292_v17 = vsel %vm289_vm1, %v290_v51, %v291_v60  ;;  %v346_v22 = vsel %vm343_vm2, %v344_v55, %v345_v62  ;;  %v294_v24 = vsel %vm289_vm1, %v291_v60, %v293_v3  ;;  %v296_v25 = vsel %vm289_vm1, %v293_v3, %v295_v56 }
  0xea   : > { %v315_v26 = vadd.f32 %v292_v17, %v261_v44  ;;  %v240_v27 = vrot.slane %v220_v10, 7  ;;  %v316_v30 = vadd.f32 %v294_v24, %v262_v57  ;;  %v317_v31 = vadd.f32 %v296_v25, %v263_v16 }
  0xeb   : > { %v348_v32 = vsel %vm343_vm2, %v345_v62, %v347_v23  ;;  %v350_v34 = vsel %vm343_vm2, %v347_v23, %v349_v59  ;;  %v244_v39 = vrot.slane %v222_v11, 7  ;;  %v223_v46 = vmul.f32 0.00390625, %v215_v28 }
  0xec   : > { %v369_v35 = vadd.f32 %v346_v22, %v315_v26  ;;  %v241_v37 = vsel %vm232_vm0, %v238_v40, %v240_v27  ;;  %v243_v38 = vsel %vm232_vm0, %v240_v27, %v242_v7  ;;  %v370_v42 = vadd.f32 %v348_v32, %v316_v30 }
  0xed   : > { %v371_v43 = vadd.f32 %v350_v34, %v317_v31  ;;  %v275_v47 = vmul.f32 %v1067_v29, %v241_v37  ;;  %v276_v48 = vmul.f32 %v1067_v29, %v243_v38  ;;  %v329_v49 = vmul.f32 %v1069_v33, %v241_v37 }
  0xee   : > { %v609_v44 = vmul.f32 -1.442695, %v369_v35  ;;  %v610_v50 = vmul.f32 -1.442695, %v370_v42  ;;  %v330_v52 = vmul.f32 %v1069_v33, %v243_v38  ;;  %v245_v40 = vsel %vm232_vm0, %v242_v7, %v244_v39 }
  0xef   : > { %v611_v51 = vmul.f32 -1.442695, %v371_v43  ;;  %v297_v53 = vrot.slane %v275_v47, 1  ;;  %v299_v54 = vrot.slane %v276_v48, 1  ;;  %v351_v45 = vrot.slane %v329_v49, 2 }
  0xf0   : > { %688 = vpow2.f32 %v609_v44  ;;  %v265_v55 = vmul.f32 %v1071_v36, %v241_v37  ;;  %v353_v57 = vrot.slane %v330_v52, 2  ;;  %v277_v58 = vmul.f32 %v1067_v29, %v245_v40 }
  0xf1   : > { %690 = vpow2.f32 %v610_v50  ;;  %v298_v60 = vsel %vm289_vm1, %v295_v56, %v297_v53  ;;  %v300_v61 = vsel %vm289_vm1, %v297_v53, %v299_v54  ;;  %v266_v62 = vmul.f32 %v1071_v36, %v243_v38 }
  0xf2   : > { %692 = vpow2.f32 %v611_v51  ;;  %v318_v63 = vadd.f32 %v298_v60, %v264_v41  ;;  %v319_v3 = vadd.f32 %v300_v61, %v265_v55  ;;  %v301_v7 = vrot.slane %v277_v58, 1 }
  0xf3   : > { %v352_v10 = vsel %vm343_vm2, %v349_v59, %v351_v45  ;;  %v354_v11 = vsel %vm343_vm2, %v351_v45, %v353_v57  ;;  %v331_v16 = vmul.f32 %v1069_v33, %v245_v40  ;;  %v246_v17 = vrot.slane %v223_v46, 7 }
  0xf4   : > { %v372_v22 = vadd.f32 %v352_v10, %v318_v63  ;;  %v373_v23 = vadd.f32 %v354_v11, %v319_v3  ;;  %v302_v24 = vsel %vm289_vm1, %v299_v54, %v301_v7  ;;  %v267_v31 = vmul.f32 %v1071_v36, %v245_v40 }
  0xf5   : > { %v320_v25 = vadd.f32 %v302_v24, %v266_v62  ;;  %v355_v56 = vrot.slane %v331_v16, 2  ;;  %v247_v26 = vsel %vm232_vm0, %v244_v39, %v246_v17  ;;  %v258_v27 = vsel %vm232_vm0, %v246_v17, 0.0 }
  0xf6   : > { %v612_v28 = vmul.f32 -1.442695, %v372_v22  ;;  %v613_v30 = vmul.f32 -1.442695, %v373_v23  ;;  %v278_v59 = vmul.f32 %v1067_v29, %v247_v26  ;;  %v279_v34 = vmul.f32 %v1067_v29, %v258_v27 }
  0xf7   : > { %v356_v32 = vsel %vm343_vm2, %v353_v57, %v355_v56  ;;  %v332_v35 = vmul.f32 %v1069_v33, %v247_v26  ;;  %v333_v37 = vmul.f32 %v1069_v33, %v258_v27  ;;  %v268_v39 = vmul.f32 %v1071_v36, %v247_v26 }
  0xf8   : > { %694 = vpow2.f32 %v612_v28  ;;  %v374_v38 = vadd.f32 %v356_v32, %v320_v25  ;;  %v303_v41 = vrot.slane %v278_v59, 1  ;;  %v305_v43 = vrot.slane %v279_v34, 1 }
  0xf9   : > { %696 = vpow2.f32 %v613_v30  ;;  %v357_v46 = vrot.slane %v332_v35, 2  ;;  %v359_v44 = vrot.slane %v333_v37, 2 }
  0xfa   : > { %v689_v42 = vpop.eup %688  ;;  %v614_v49 = vmul.f32 -1.442695, %v374_v38  ;;  %v304_v50 = vsel %vm289_vm1, %v301_v7, %v303_v41  ;;  %v306_v52 = vsel %vm289_vm1, %v303_v41, %v305_v43 }
  0xfb   : > { %v691_v47 = vpop.eup %690  ;;  %v401_v48 = vadd.f32 1.0, %v689_v42  ;;  %v321_v33 = vadd.f32 %v304_v50, %v267_v31  ;;  %v358_v40 = vsel %vm343_vm2, %v355_v56, %v357_v46  ;;  %v322_v36 = vadd.f32 %v306_v52, %v268_v39 }
  0xfc   : > { %v693_v29 = vpop.eup %692  ;;  %v402_v51 = vadd.f32 1.0, %v691_v47  ;;  %v360_v54 = vsel %vm343_vm2, %v357_v46, %v359_v44 }
  0xfd   : > { %v403_v53 = vadd.f32 1.0, %v693_v29  ;;  %698 = vrcp.f32 %v401_v48  ;;  %v375_v45 = vadd.f32 %v358_v40, %v321_v33  ;;  %v376_v55 = vadd.f32 %v360_v54, %v322_v36 }
  0xfe   : > { %700 = vrcp.f32 %v402_v51 }
  0xff   : > { %702 = vpow2.f32 %v614_v49  ;;  %v615_v57 = vmul.f32 -1.442695, %v375_v45  ;;  %v616_v58 = vmul.f32 -1.442695, %v376_v55 }
 0x100   : > { %704 = vrcp.f32 %v403_v53 }
 0x101   : > { %706 = vpow2.f32 %v615_v57 }
 0x102   : > { %v695_v60 = vpop.eup %694  ;;  %708 = vpow2.f32 %v616_v58 }
 0x103   : > { %v697_v61 = vpop.eup %696  ;;  %v404_v62 = vadd.f32 1.0, %v695_v60 }
 0x104   : > { %v405_v63 = vadd.f32 1.0, %v697_v61 }
 0x105   : > { %710 = vrcp.f32 %v404_v62 }
 0x106   : > { %712 = vrcp.f32 %v405_v63 }
 0x107   : > { %v699_v3 = vpop.eup %698 }
 0x108   : > { %v701_v7 = vpop.eup %700  ;;  %427 = vperm.xlu0 %686, %v699_v3  }
 0x109   : > { %432 = vperm.xlu1 %687, %v701_v7   ;;  %v703_v10 = vpop.eup %702 }
 0x10a   : > { %v705_v11 = vpop.eup %704  ;;  %v406_v16 = vadd.f32 1.0, %v703_v10 }
 0x10b   : > { %v707_v17 = vpop.eup %706 }
 0x10c   : > { %714 = vrcp.f32 %v406_v16  ;;  %v407_v22 = vadd.f32 1.0, %v707_v17  ;;  %v709_v23 = vpop.eup %708 }
 0x10d   : > { %437 = vperm.xlu1 %687, %v705_v11   ;;  %v408_v25 = vadd.f32 1.0, %v709_v23 }
 0x10e   : > { %716 = vrcp.f32 %v407_v22 }
 0x10f   : > { %v711_v24 = vpop.eup %710  ;;  %718 = vrcp.f32 %v408_v25 }
 0x110   : > { %v713_v56 = vpop.eup %712 }
 0x111   : > { %442 = vperm.xlu1 %687, %v711_v24  }
 0x115   : > { %447 = vperm.xlu1 %687, %v713_v56  }
 0x116   : > { %v715_v26 = vpop.eup %714 }
 0x118   : > { %v717_v27 = vpop.eup %716 }
 0x119   : > { %452 = vperm.xlu1 %687, %v715_v26   ;;  %v719_v28 = vpop.eup %718 }
 0x11d   : > { %457 = vperm.xlu1 %687, %v717_v27  }
 0x121   : > { %462 = vperm.xlu1 %687, %v719_v28  }
 0x187   : > { %v428_v30 = vpop.permute.xlu0 %427 }
 0x188   : > { %v433_v31 = vpop.permute.xlu1 %432  ;;  %v465_v59 = vmul.f32 %v428_v30, %v1010_v2  ;;  %v466_v32 = vmul.f32 %v428_v30, %v1015_v4 }
 0x189   : > { %v467_v34 = vmul.f32 %v433_v31, %v1026_v8  ;;  %v468_v35 = vmul.f32 %v433_v31, %v1029_v9 }
 0x18a   : > { %481 = vst [vmem:[%s1133_s7] sm:$0xff] %v465_v59  ;;  %482 = vst [vmem:[%s1133_s7 + $0x8] sm:$0xff] %v466_v32 }
 0x18b   : > { %483 = vst [vmem:[%s1133_s7 + $0x10] sm:$0xff] %v467_v34  ;;  %484 = vst [vmem:[%s1133_s7 + $0x18] sm:$0xff] %v468_v35 }
 0x18c   : > { %v438_v2 = vpop.permute.xlu1 %437 }
 0x18d   : > { %v469_v4 = vmul.f32 %v438_v2, %v1004_v0  ;;  %v470_v8 = vmul.f32 %v438_v2, %v1007_v1 }
 0x18f   : > { %485 = vst [vmem:[%s1133_s7 + $0x20] sm:$0xff] %v469_v4  ;;  %486 = vst [vmem:[%s1133_s7 + $0x28] sm:$0xff] %v470_v8 }
 0x190   : > { %v443_v9 = vpop.permute.xlu1 %442 }
 0x191   : > { %v471_v37 = vmul.f32 %v443_v9, %v1018_v5  ;;  %v472_v38 = vmul.f32 %v443_v9, %v1021_v6 }
 0x193   : > { %487 = vst [vmem:[%s1133_s7 + $0x30] sm:$0xff] %v471_v37  ;;  %488 = vst [vmem:[%s1133_s7 + $0x38] sm:$0xff] %v472_v38 }
 0x194   : > { %v448_v39 = vpop.permute.xlu1 %447 }
 0x195   : > { %v473_v0 = vmul.f32 %v448_v39, %v1042_v14  ;;  %v474_v1 = vmul.f32 %v448_v39, %v1045_v15 }
 0x197   : > { %489 = vst [vmem:[%s1133_s7 + $0x40] sm:$0xff] %v473_v0  ;;  %490 = vst [vmem:[%s1133_s7 + $0x48] sm:$0xff] %v474_v1 }
 0x198   : > { %v453_v41 = vpop.permute.xlu1 %452 }
 0x199   : > { %v475_v42 = vmul.f32 %v453_v41, %v1036_v12  ;;  %v476_v5 = vmul.f32 %v453_v41, %v1039_v13 }
 0x19b   : > { %491 = vst [vmem:[%s1133_s7 + $0x50] sm:$0xff] %v475_v42  ;;  %492 = vst [vmem:[%s1133_s7 + $0x58] sm:$0xff] %v476_v5 }
 0x19c   : > { %v458_v6 = vpop.permute.xlu1 %457 }
 0x19d   : > { %v477_v43 = vmul.f32 %v458_v6, %v1058_v20  ;;  %v478_v14 = vmul.f32 %v458_v6, %v1061_v21 }
 0x19f   : > { %493 = vst [vmem:[%s1133_s7 + $0x60] sm:$0xff] %v477_v43  ;;  %494 = vst [vmem:[%s1133_s7 + $0x68] sm:$0xff] %v478_v14 }
 0x1a0   : > { %v463_v15 = vpop.permute.xlu1 %462 }
 0x1a1   : > { %v479_v12 = vmul.f32 %v463_v15, %v1052_v18  ;;  %v480_v13 = vmul.f32 %v463_v15, %v1055_v19 }
 0x1a3   : > { %495 = vst [vmem:[%s1133_s7 + $0x70] sm:$0xff] %v479_v12  ;;  %496 = vst [vmem:[%s1133_s7 + $0x78] sm:$0xff] %v480_v13 }
 0x1a4   : > { %778 = shalt.err (!%p775_p11)
}
 0x1a5   : > { %s779_s6 = scalar_lea.hbm %s1164_s30, 2048  ;;  %s783_s24 = scalar_lea.hbm %s1216_s2, 4096 }
 0x1a6   : > { %p780_p0 = scmp.ne.s32.totalorder %s1164_s30, %s779_s6  ;;  %p784_p6 = scmp.lt.u32.totalorder %s1164_s30, %s1216_s2 }
 0x1a7   : > { %p785_p3 = scmp.lt.u32.totalorder %s783_s24, %s779_s6  ;;  %p787_p5 = scmp.lt.u32.totalorder %s779_s6, %s1164_s30 }
 0x1a8   : > { %p781_p2 = pnand %p780_p0, %p1230_p12 }
 0x1a9   : > { %p786_p13 = por %p785_p3, %p784_p6 }
 0x1aa   : > { %p782_p7 = pneg %p781_p2 }
 0x1ab   : > { %p788_p8 = por %p787_p5, %p786_p13 }
 0x1ad   : > { %p789_p9 = pnand %p788_p8, %p782_p7 }
 0x1af   : > { %792 = shalt.err (!%p789_p9)
}
 0x1b0   : > { %s843_s23 = smov 256   ;;  %s844_s29 = smov 16  }
 0x1b1   : > { %630 = dma.vmem_to_hbm [thread:$0]  (%p1230_p12), %s1166_s17, 2048, %s1164_s30, %s498_s13, %s843_s23, %s843_s23, %s844_s29  }
 0x1b2 PF: > { %s526_s7 = sand.u32 1, %s823_s9   ;;  %p1231_p10 = scmp.ne.s32.totalorder %s1223_s22, 0 }
 0x1b3   : > { %p1232_p1 = scmp.ge.s32.totalorder %s835_s12, 2  ;;  %s527_s16 = scalar_lea.sflag [#allocation4], %s526_s7 }
 0x1b5   : > { %p641_p4 = pnand %p1232_p1, %p1231_p10 }
 0x1b7   : > { %818 = dma.done.wait (!%p641_p4), %s527_s16, 2048  }
 0x1b8   : > { %820 = vsyncadd (!%p641_p4), %s527_s16, 4294965248  ;;  %p16_p11 = scmp.ge.s32.totalorder %s885_s15, 4   ;;  %s1233_s9 = smov %s827_s10 }
 0x1b9   : > { %s1234_s10 = smov %s831_s11  ;;  %s1235_s11 = smov %s897_s18 }
 0x1ba   : > { %s1236_s12 = smov %s885_s15  ;;  %18 = sbr.rel (!%p16_p11) target bundleno = 6 (0x6), region = 78 }
 0x1c1   :  { %532 = vsyncpa [#allocation3], 1 }
 0x1c2   :  { %534 = vsyncpa [#allocation3 + $0x1], 1 }
 0x1c3   :  { %535 = vsyncpa [#allocation4], 1 }
 0x1c4   :  { %537 = vsyncpa [#allocation4 + $0x1], 1 }
 0x1c5   :  { %538 = vsyncpa [#allocation5], 1 }
 0x1c6   :  { %540 = vsyncpa [#allocation5 + $0x1], 1 }

</bundles_post_ra>
